<compile_context>
chip_gen: v7x
topology: tpu7x:2x2x1
jax: 0.10.0
libtpu: 0.0.40
codegen_flags: <defaults>
</compile_context>

<pallas_src>
import functools
import math

import jax
import jax.numpy as jnp
from jax import lax
from jax.experimental import pallas as pl
from jax.experimental.pallas import tpu as pltpu


# ----------------------------- kernel helpers --------------------------------

def _layer_norm(x, gamma, beta, eps=1e-5):
    mean = jnp.mean(x, axis=-1, keepdims=True)
    var = jnp.mean((x - mean) ** 2, axis=-1, keepdims=True)
    return (x - mean) * lax.rsqrt(var + eps) * gamma + beta


def _leaky_relu(x, slope=0.2):
    return jnp.where(x > 0, x, slope * x)


# ----------------------------- kernels ----------------------------------------

def emb_kernel(x_ref, pos_ref, emb_w_ref, emb_b_ref, ln1_g_ref, ln1_b_ref,
               hin_ref):
    """self.emb + positional add for all T*B rows in one shot (no grid)."""
    h = jnp.dot(x_ref[...], emb_w_ref[...].astype(jnp.float32),
                preferred_element_type=jnp.float32) + emb_b_ref[...]
    h = _layer_norm(h, ln1_g_ref[...], ln1_b_ref[...])
    h = _leaky_relu(h)
    hin_ref[...] = h + pos_ref[...]


def gru_kernel(n_layers, hidden_size,
               hin_ref, hid_ref, wgru_ref, brz_ref, bni_ref, bnh_ref,
               hout_ref, newhid_ref):
    """One grid step == one decode step; grid axis 0 is the (serial) time loop.
    Only the GRU recurrence lives here."""
    H = hidden_size
    t = pl.program_id(0)

    # Initialise the resident hidden-state accumulator from the input hidden.
    @pl.when(t == 0)
    def _():
        newhid_ref[...] = hid_ref[...]

    h = hin_ref[0]                                                 # (B, H) f32
    for i in range(n_layers):
        h_prev = newhid_ref[i]                                     # (B, H)
        xh = jnp.concatenate([h, h_prev], axis=-1)                 # (B, 2H)
        g = jnp.dot(xh, wgru_ref[i].astype(jnp.float32),
                    preferred_element_type=jnp.float32)            # (B, 4H)
        rz = jax.nn.sigmoid(g[:, :2 * H] + brz_ref[i])             # (B, 2H)
        r = rz[:, :H]
        z = rz[:, H:2 * H]
        n = jnp.tanh(g[:, 2 * H:3 * H] + bni_ref[i]
                     + r * (g[:, 3 * H:4 * H] + bnh_ref[i]))
        h_new = (1.0 - z) * n + z * h_prev
        newhid_ref[i] = h_new
        h = h_new
    hout_ref[0] = h                                                # stream out


def output_kernel(h_ref, o1_w_ref, o1_b_ref, ln2_g_ref, ln2_b_ref,
                  o2_w_ref, o2_b_ref, pred_ref):
    """self.output head for all T*B rows in one shot (no grid)."""
    o = jnp.dot(h_ref[...], o1_w_ref[...].astype(jnp.float32),
                preferred_element_type=jnp.float32) + o1_b_ref[...]
    o = _layer_norm(o, ln2_g_ref[...], ln2_b_ref[...])
    o = _leaky_relu(o)
    pred_ref[...] = jnp.dot(o, o2_w_ref[...].astype(jnp.float32),
                            preferred_element_type=jnp.float32) + o2_b_ref[...]


# ----------------------------- wrappers ---------------------------------------

def text_vae_decoder_decode(inputs_seq, hidden, p_seq, params, pe_table,
                            n_layers, hidden_size):
    """Run T decode steps (== T applications of the module forward).  The
    non-recurrent emb / output stages are batched over all T steps; only the
    GRU recurrence runs in the grid=(T,) serial loop with weights and hidden
    state resident in VMEM."""
    T, B, input_size = inputs_seq.shape
    H = hidden_size
    L = n_layers
    output_size = params["o2_w"].shape[1]
    N = T * B

    # Gather the T positional-encoding rows once in glue (tiny) and broadcast
    # over the batch.  TODO(synk): with scalar-prefetch of p this gather could
    # live fully in-kernel; kept in glue for lowering simplicity.
    pos_flat = jnp.broadcast_to(
        pe_table[p_seq].astype(jnp.float32)[:, None, :], (T, B, H)
    ).reshape(N, H)

    # --- stage A: emb + positional add, batched over all T*B rows -----------
    hin_flat = pl.pallas_call(
        emb_kernel,
        out_shape=jax.ShapeDtypeStruct((N, H), jnp.float32),
    )(inputs_seq.reshape(N, input_size), pos_flat,
      params["emb_w"], params["emb_b"], params["ln1_g"], params["ln1_b"])

    hin_seq = hin_flat.reshape(T, B, H)

    # --- stage B: serial GRU recurrence --------------------------------------
    def resident(shape):
        nd = len(shape)
        return pl.BlockSpec(shape, lambda t, _nd=nd: (0,) * _nd)

    def per_step(shape):
        nd = len(shape)
        return pl.BlockSpec((1,) + tuple(shape[1:]),
                            lambda t, _nd=nd: (t,) + (0,) * (_nd - 1))

    gru_args = (hin_seq, hidden,
                params["wgru"], params["brz"], params["bni"], params["bnh"])
    in_specs = [per_step(hin_seq.shape)] + [resident(a.shape)
                                            for a in gru_args[1:]]
    out_shapes = (jax.ShapeDtypeStruct((T, B, H), jnp.float32),
                  jax.ShapeDtypeStruct((L, B, H), jnp.float32))
    out_specs = (per_step((T, B, H)), resident((L, B, H)))

    hout_seq, new_hidden = pl.pallas_call(
        functools.partial(gru_kernel, n_layers, hidden_size),
        out_shape=out_shapes,
        grid=(T,),
        in_specs=in_specs,
        out_specs=out_specs,
        input_output_aliases={1: 1},   # hidden (input) aliases new_hidden (output)
        compiler_params=pltpu.CompilerParams(
            dimension_semantics=("arbitrary",)),   # recurrent time axis
    )(*gru_args)

    # --- stage C: output head, batched over all T*B rows ---------------------
    preds_flat = pl.pallas_call(
        output_kernel,
        out_shape=jax.ShapeDtypeStruct((N, output_size), jnp.float32),
    )(hout_seq.reshape(N, H),
      params["o1_w"], params["o1_b"], params["ln2_g"], params["ln2_b"],
      params["o2_w"], params["o2_b"])

    return preds_flat.reshape(T, B, output_size), new_hidden


def text_vae_decoder_step(inputs, last_pred, hidden, p, params, pe_table,
                          n_layers, hidden_size):
    """Exact equivalent of TextVAEDecoder.forward (one step).  `last_pred`
    is unused, matching the PyTorch module."""
    del last_pred
    preds, new_hidden = text_vae_decoder_decode(
        inputs[None], hidden, jnp.asarray([p], jnp.int32), params, pe_table,
        n_layers, hidden_size)
    return preds[0], new_hidden


# ----------------------------- param / buffer setup ---------------------------

def make_positional_encoding(d_model, max_len=300):
    position = jnp.arange(max_len, dtype=jnp.float32)[:, None]
    div_term = jnp.exp(jnp.arange(0, d_model, 2, dtype=jnp.float32)
                       * (-math.log(10000.0) / d_model))
    pe = jnp.zeros((max_len, d_model), jnp.float32)
    pe = pe.at[:, 0::2].set(jnp.sin(position * div_term))
    pe = pe.at[:, 1::2].set(jnp.cos(position * div_term))
    return pe


def xavier_normal(key, fan_in, fan_out):
    std = math.sqrt(2.0 / (fan_in + fan_out))
    return jax.random.normal(key, (fan_in, fan_out), jnp.float32) * std


def init_params(key, text_size, input_size, output_size, hidden_size, n_layers):
    ks = list(jax.random.split(key, 8 + n_layers))
    H = hidden_size
    bf16 = jnp.bfloat16
    params = {
        # emb: Linear(input_size, H) + LayerNorm(H)
        "emb_w": xavier_normal(ks[0], input_size, H).astype(bf16),
        "emb_b": jnp.zeros((1, H), jnp.float32),
        "ln1_g": jnp.ones((1, H), jnp.float32),
        "ln1_b": jnp.zeros((1, H), jnp.float32),
        # z2init: Linear(text_size, H * n_layers)  (used only in glue)
        "z2init_w": xavier_normal(ks[1], text_size, H * n_layers),
        "z2init_b": jnp.zeros((H * n_layers,), jnp.float32),
        # output: Linear(H, H) + LayerNorm(H) + Linear(H, output_size)
        "o1_w": xavier_normal(ks[2], H, H).astype(bf16),
        "o1_b": jnp.zeros((1, H), jnp.float32),
        "ln2_g": jnp.ones((1, H), jnp.float32),
        "ln2_b": jnp.zeros((1, H), jnp.float32),
        "o2_w": xavier_normal(ks[3], H, output_size).astype(bf16),
        "o2_b": jnp.zeros((1, output_size), jnp.float32),
    }
    # GRU cells: PyTorch default init U(-1/sqrt(H), 1/sqrt(H)); gate order (r,z,n).
    bound = 1.0 / math.sqrt(H)
    wih, whh, bih, bhh = [], [], [], []
    for i in range(n_layers):
        k0, k1, k2, k3 = jax.random.split(ks[4 + i], 4)
        wih.append(jax.random.uniform(k0, (H, 3 * H), jnp.float32, -bound, bound))
        whh.append(jax.random.uniform(k1, (H, 3 * H), jnp.float32, -bound, bound))
        bih.append(jax.random.uniform(k2, (1, 3 * H), jnp.float32, -bound, bound))
        bhh.append(jax.random.uniform(k3, (1, 3 * H), jnp.float32, -bound, bound))
    # canonical (bf16-rounded) GRU weights, kept for the reference
    params["wih"] = jnp.stack(wih).astype(bf16)      # (L, H, 3H)
    params["whh"] = jnp.stack(whh).astype(bf16)      # (L, H, 3H)
    params["bih"] = jnp.stack(bih)                   # (L, 1, 3H) f32
    params["bhh"] = jnp.stack(bhh)                   # (L, 1, 3H) f32

    # fused kernel-side layout: (L, 2H, 4H), columns = [r | z | n_i | n_h]
    zeros = jnp.zeros((n_layers, H, H), bf16)
    wih_b, whh_b = params["wih"], params["whh"]
    top = jnp.concatenate([wih_b[:, :, :2 * H], wih_b[:, :, 2 * H:], zeros], axis=-1)
    bot = jnp.concatenate([whh_b[:, :, :2 * H], zeros, whh_b[:, :, 2 * H:]], axis=-1)
    params["wgru"] = jnp.concatenate([top, bot], axis=1)
    params["brz"] = params["bih"][:, :, :2 * H] + params["bhh"][:, :, :2 * H]
    params["bni"] = params["bih"][:, :, 2 * H:]
    params["bnh"] = params["bhh"][:, :, 2 * H:]
    return params


def get_init_hidden(latent, params, n_layers, hidden_size):
    # plain-JAX glue equivalent of TextVAEDecoder.get_init_hidden
    h = latent @ params["z2init_w"] + params["z2init_b"]   # (B, H * n_layers)
    h = h.reshape(latent.shape[0], n_layers, hidden_size)
    return jnp.transpose(h, (1, 0, 2))                      # (n_layers, B, H)


# ----------------------------- pure-JAX reference ------------------------------

def reference_step(inputs, hidden, pos_row, params, n_layers, hidden_size):
    H = hidden_size
    f32 = jnp.float32
    h = inputs @ params["emb_w"].astype(f32) + params["emb_b"]
    h = _layer_norm(h, params["ln1_g"], params["ln1_b"])
    h = _leaky_relu(h)
    h = h + pos_row
    new_hidden = []
    for i in range(n_layers):
        hp = hidden[i]
        gi = h @ params["wih"][i].astype(f32) + params["bih"][i]
        gh = hp @ params["whh"][i].astype(f32) + params["bhh"][i]
        r = jax.nn.sigmoid(gi[:, :H] + gh[:, :H])
        z = jax.nn.sigmoid(gi[:, H:2 * H] + gh[:, H:2 * H])
        n = jnp.tanh(gi[:, 2 * H:] + r * gh[:, 2 * H:])
        hn = (1.0 - z) * n + z * hp
        new_hidden.append(hn)
        h = hn
    o = h @ params["o1_w"].astype(f32) + params["o1_b"]
    o = _layer_norm(o, params["ln2_g"], params["ln2_b"])
    o = _leaky_relu(o)
    pred = o @ params["o2_w"].astype(f32) + params["o2_b"]
    return pred, jnp.stack(new_hidden)


def reference_decode(inputs_seq, hidden, p_seq, params, pe_table,
                     n_layers, hidden_size):
    T = inputs_seq.shape[0]
    preds = []
    h_state = hidden
    for t in range(T):
        pos_row = pe_table[p_seq[t]].reshape(1, hidden_size)
        pred, h_state = reference_step(inputs_seq[t], h_state, pos_row,
                                       params, n_layers, hidden_size)
        preds.append(pred)
    return jnp.stack(preds), h_state


# ----------------------------- main --------------------------------------------

if __name__ == "__main__":
    B = 2
    T = 6
    text_size = 48
    input_size = 16
    output_size = 24
    hidden_size = 32
    n_layers = 2

    key = jax.random.PRNGKey(0)
    k_param, k_x, k_z, k_lp = jax.random.split(key, 4)

    params = init_params(k_param, text_size, input_size, output_size,
                         hidden_size, n_layers)
    pe_table = make_positional_encoding(hidden_size, max_len=300)

    inputs_seq = jax.random.normal(k_x, (T, B, input_size), jnp.float32)
    latent = jax.random.normal(k_z, (B, text_size), jnp.float32)
    last_pred = jax.random.normal(k_lp, (B, output_size), jnp.float32)  # unused
    p_seq = jnp.arange(T, dtype=jnp.int32)
    hidden0 = get_init_hidden(latent, params, n_layers, hidden_size)

    # pure-JAX reference, computed up-front
    ref_preds, ref_hidden = reference_decode(inputs_seq, hidden0, p_seq,
                                             params, pe_table,
                                             n_layers, hidden_size)

    # single-step call (exact module-forward semantics)
    step_pred, step_hidden = text_vae_decoder_step(
        inputs_seq[0], last_pred, hidden0, 0, params, pe_table,
        n_layers, hidden_size)

    # full multi-step decode with the recurrence inside a grid=(T,) kernel
    preds, new_hidden = text_vae_decoder_decode(
        inputs_seq, hidden0, p_seq, params, pe_table, n_layers, hidden_size)

    preds = jax.block_until_ready(preds)
    new_hidden = jax.block_until_ready(new_hidden)
    step_pred = jax.block_until_ready(step_pred)

    assert preds.shape == (T, B, output_size)
    assert new_hidden.shape == (n_layers, B, hidden_size)
    assert step_pred.shape == (B, output_size)

    atol = rtol = 1e-3
    assert jnp.allclose(preds, ref_preds, atol=atol, rtol=rtol)
    assert jnp.allclose(new_hidden, ref_hidden, atol=atol, rtol=rtol)
    assert jnp.allclose(step_pred, ref_preds[0], atol=atol, rtol=rtol)

    print("KERNEL_OK")
</pallas_src>

<mosaic_0001>
module attributes {stable_mosaic.version = 11 : i64} {
  func.func @emb_kernel(%arg0: memref<2x16xf32, #tpu.memory_space<vmem>>, %arg1: memref<2x32xf32, #tpu.memory_space<vmem>>, %arg2: memref<16x32xbf16, #tpu.memory_space<vmem>>, %arg3: memref<1x32xf32, #tpu.memory_space<vmem>>, %arg4: memref<1x32xf32, #tpu.memory_space<vmem>>, %arg5: memref<1x32xf32, #tpu.memory_space<vmem>>, %arg6: memref<2x32xf32, #tpu.memory_space<vmem>>) attributes {dimension_semantics = [], scalar_prefetch = 0 : i64, scratch_operands = 0 : i64, tpu.core_type = #tpu.core_type<tc>} {
    %c0 = arith.constant 0 : index
    %c0_0 = arith.constant 0 : index
    %0 = vector.load %arg0[%c0, %c0_0] : memref<2x16xf32, #tpu.memory_space<vmem>>, vector<2x16xf32>
    %c0_1 = arith.constant 0 : index
    %c0_2 = arith.constant 0 : index
    %1 = vector.load %arg2[%c0_1, %c0_2] : memref<16x32xbf16, #tpu.memory_space<vmem>>, vector<16x32xbf16>
    %2 = arith.extf %1 : vector<16x32xbf16> to vector<16x32xf32>
    %cst = arith.constant dense<0.000000e+00> : vector<2x32xf32>
    %3 = tpu.matmul %0, %2, %cst {dimension_numbers = #tpu.dot_dimension_numbers<[1], [0], [0], [1], [0, 0, 1, 1], [], []>} : vector<2x16xf32>, vector<16x32xf32>, vector<2x32xf32> -> vector<2x32xf32>
    %c0_3 = arith.constant 0 : index
    %c0_4 = arith.constant 0 : index
    %4 = vector.load %arg3[%c0_3, %c0_4] : memref<1x32xf32, #tpu.memory_space<vmem>>, vector<1x32xf32>
    %5 = vector.broadcast %4 : vector<1x32xf32> to vector<2x32xf32>
    %6 = arith.addf %3, %5 : vector<2x32xf32>
    %c0_5 = arith.constant 0 : index
    %c0_6 = arith.constant 0 : index
    %7 = vector.load %arg4[%c0_5, %c0_6] : memref<1x32xf32, #tpu.memory_space<vmem>>, vector<1x32xf32>
    %c0_7 = arith.constant 0 : index
    %c0_8 = arith.constant 0 : index
    %8 = vector.load %arg5[%c0_7, %c0_8] : memref<1x32xf32, #tpu.memory_space<vmem>>, vector<1x32xf32>
    %cst_9 = arith.constant dense<0.000000e+00> : vector<2xf32>
    %9 = vector.multi_reduction <add>, %6, %cst_9 [1] : vector<2x32xf32> to vector<2xf32>
    %10 = vector.shape_cast %9 : vector<2xf32> to vector<2x1xf32>
    %cst_10 = arith.constant 3.200000e+01 : f32
    %11 = vector.broadcast %cst_10 : f32 to vector<2x1xf32>
    %12 = arith.divf %10, %11 : vector<2x1xf32>
    %13 = vector.broadcast %12 : vector<2x1xf32> to vector<2x32xf32>
    %14 = arith.subf %6, %13 : vector<2x32xf32>
    %15 = arith.mulf %14, %14 : vector<2x32xf32>
    %cst_11 = arith.constant dense<0.000000e+00> : vector<2xf32>
    %16 = vector.multi_reduction <add>, %15, %cst_11 [1] : vector<2x32xf32> to vector<2xf32>
    %17 = vector.shape_cast %16 : vector<2xf32> to vector<2x1xf32>
    %cst_12 = arith.constant 3.200000e+01 : f32
    %18 = vector.broadcast %cst_12 : f32 to vector<2x1xf32>
    %19 = arith.divf %17, %18 : vector<2x1xf32>
    %20 = vector.broadcast %12 : vector<2x1xf32> to vector<2x32xf32>
    %21 = arith.subf %6, %20 : vector<2x32xf32>
    %cst_13 = arith.constant 9.99999974E-6 : f32
    %22 = vector.broadcast %cst_13 : f32 to vector<2x1xf32>
    %23 = arith.addf %19, %22 : vector<2x1xf32>
    %24 = math.rsqrt %23 : vector<2x1xf32>
    %25 = vector.broadcast %24 : vector<2x1xf32> to vector<2x32xf32>
    %26 = arith.mulf %21, %25 : vector<2x32xf32>
    %27 = vector.broadcast %7 : vector<1x32xf32> to vector<2x32xf32>
    %28 = arith.mulf %26, %27 : vector<2x32xf32>
    %29 = vector.broadcast %8 : vector<1x32xf32> to vector<2x32xf32>
    %30 = arith.addf %28, %29 : vector<2x32xf32>
    %cst_14 = arith.constant 0.000000e+00 : f32
    %31 = vector.broadcast %cst_14 : f32 to vector<2x32xf32>
    %32 = arith.cmpf ogt, %30, %31 : vector<2x32xf32>
    %cst_15 = arith.constant 2.000000e-01 : f32
    %33 = vector.broadcast %cst_15 : f32 to vector<2x32xf32>
    %34 = arith.mulf %33, %30 : vector<2x32xf32>
    %35 = arith.select %32, %30, %34 : vector<2x32xi1>, vector<2x32xf32>
    %c0_16 = arith.constant 0 : index
    %c0_17 = arith.constant 0 : index
    %36 = vector.load %arg1[%c0_16, %c0_17] : memref<2x32xf32, #tpu.memory_space<vmem>>, vector<2x32xf32>
    %37 = arith.addf %35, %36 : vector<2x32xf32>
    %c0_18 = arith.constant 0 : index
    %c0_19 = arith.constant 0 : index
    %38 = vector.load %arg6[%c0_18, %c0_19] : memref<2x32xf32, #tpu.memory_space<vmem>>, vector<2x32xf32>
    tpu.vector_store %arg6[%c0_18, %c0_19], %37 {strides = array<i32>} : memref<2x32xf32, #tpu.memory_space<vmem>>, vector<2x32xf32>,
    return
  }
}

</mosaic_0001>

<bundles_post_ra>
// kernel: tpu_custom_call.1
= control target key start
LH: loop header
LB: loop body
LE: loop exit
PB: predicated region body
PF: predicated region fallthrough
CT: control target
= control target key end

     0   :  { %11 = vsyncpa [#allocation3], 0  ;;  %s393_s0 = inlined_call_operand.hbm [shape: f32[2,16], index: 0, kind: input, shape index: {}]   ;;  %s394_s1 = inlined_call_operand.vmem [shape: f32[2,32], index: 1, kind: input, shape index: {}]   ;;  %s395_s2 = inlined_call_operand.hbm [shape: bf16[16,32], index: 2, kind: input, shape index: {}]   ;;  %s396_s3 = inlined_call_operand.vmem [shape: f32[1,32], index: 3, kind: input, shape index: {}]   ;;  %s397_s4 = inlined_call_operand.vmem [shape: f32[1,32], index: 4, kind: input, shape index: {}]   ;;  %s398_s5 = inlined_call_operand.vmem [shape: f32[1,32], index: 5, kind: input, shape index: {}]   ;;  %s399_s6 = inlined_call_operand.hbm [shape: f32[2,32], index: 6, kind: output, shape index: {}]  }
   0x1   :  { %12 = vsyncpa [#allocation6], 0 }
   0x2   :  { %13 = vsyncpa [#allocation4], 0  ;;  %s292_s21 = smov [#allocation2]   ;;  %s293_s23 = smov [#allocation5]  }
   0x3   :  { %s20_s22 = sshll.u32 %s292_s21, 4  ;;  %s31_s24 = sshll.u32 %s293_s23, 4  ;;  %s21_s22 = int_to_ptr.vmem [resolvable:$true] %s20_s22  ;;  %s335_s24 = int_to_ptr.vmem [resolvable:$true] %s31_s24 }
   0x4   :  { %s220_s27 = scalar_lea.hbm %s393_s0, 32 }
   0x5   :  { %p221_p0 = scmp.ne.s32.totalorder %s393_s0, %s220_s27  ;;  %p224_p1 = scmp.lt.u32.totalorder %s220_s27, %s393_s0 }
   0x7   :  { %p226_p2 = pnand %p224_p1, %p221_p0 }
   0x9   :  { %229 = shalt.err (!%p226_p2)
}
   0xa   :  { %s230_s8 = scalar_lea.vmem %s21_s22, 32  ;;  %p235_p4 = scmp.lt.s32.totalorder %s21_s22, %s21_s22 }
   0xb   :  { %p231_p3 = scmp.ne.s32.totalorder %s21_s22, %s230_s8  ;;  %p236_p5 = scmp.lt.s32.totalorder %s230_s8, %s230_s8 }
   0xd   :  { %p237_p6 = por %p236_p5, %p235_p4 }
   0xf   :  { %p238_p7 = pnand %p237_p6, %p231_p3 }
  0x11   :  { %241 = shalt.err (!%p238_p7)
}
  0x12   :  { %23 = dma.hbm_to_vmem [thread:$0]  %s393_s0, 32, %s21_s22, [#allocation3]  }
  0x13   :  { %s242_s13 = scalar_lea.hbm %s395_s2, 128 }
  0x14   :  { %p243_p8 = scmp.ne.s32.totalorder %s395_s2, %s242_s13  ;;  %p246_p9 = scmp.lt.u32.totalorder %s242_s13, %s395_s2 }
  0x16   :  { %p248_p10 = pnand %p246_p9, %p243_p8 }
  0x18   :  { %251 = shalt.err (!%p248_p10)
}
  0x19   :  { %s252_s18 = scalar_lea.vmem %s335_s24, 128  ;;  %p257_p12 = scmp.lt.s32.totalorder %s335_s24, %s335_s24 }
  0x1a   :  { %p253_p11 = scmp.ne.s32.totalorder %s335_s24, %s252_s18  ;;  %p258_p13 = scmp.lt.s32.totalorder %s252_s18, %s252_s18 }
  0x1c   :  { %p259_p0 = por %p258_p13, %p257_p12 }
  0x1e   :  { %p260_p1 = pnand %p259_p0, %p253_p11 }
  0x20   :  { %263 = shalt.err (!%p260_p1)
}
  0x21   :  { %s294_s0 = smov 64   ;;  %s295_s19 = smov 4  }
  0x22   :  { %37 = dma.hbm_to_vmem [thread:$0]  %s395_s2, 128, %s335_s24, [#allocation6], %s294_s0, %s294_s0, %s295_s19  }
  0x23   :  { %286 = dma.done.wait [#allocation3], 32  }
  0x24   :  { %287 = vsyncadd [#allocation3], 4294967264 }
  0x25   :  { %288 = dma.done.wait [#allocation6], 128  }
  0x26   :  { %289 = vsyncadd [#allocation6], 4294967168  ;;  %v296_v0 = vmov 0.0|0.0   ;;  %vm297_vm0 = vmmov 0   ;;  %v298_v1 = vmov 0.0   ;;  %v194_v2 = vld [vmem:[#allocation5] sm:$0xff]  }
  0x27   :  { %207 = vmatprep.subr.bf16.mxu0 %v296_v0  ;;  %204 = vmatprep.mubr.msk.f32.mxu0 %vm297_vm0, %v298_v1  ;;  %v50_v3 = vld [vmem:[#allocation2] sm:$0x3]  ;;  %vm62_vm1 = vcmask 130048   ;;  %vm138_vm2 = vcmask 254976   ;;  %s299_s28 = smov [#allocation7]  }
  0x28   :  { %209 = vmatpush3.bf16.msra.mxu0 %v194_v2  ;;  %v189_v4 = vld [vmem:[%s396_s3] ss:$0 sm:$0xff]  ;;  %s179_s29 = sshll.u32 %s299_s28, 4  ;;  %s180_s29 = int_to_ptr.vmem [resolvable:$true] %s179_s29 }
  0x29   :  { %v191_v18 = vld [vmem:[%s397_s4] ss:$0 sm:$0xff]  ;;  %s264_s4 = scalar_lea.vmem %s180_s29, 32  ;;  %p269_p3 = scmp.lt.s32.totalorder %s180_s29, %s180_s29 }
  0x2a   :  { %v192_v20 = vld [vmem:[%s398_s5] ss:$0 sm:$0xff]  ;;  %p265_p2 = scmp.ne.s32.totalorder %s180_s29, %s264_s4  ;;  %p270_p4 = scmp.lt.s32.totalorder %s264_s4, %s264_s4 }
  0x2b   :  { %205 = vmatmul.mubr.msk.f32.vlgmr.msra.gmra.mrb[0].mxu0 %vm62_vm1, %v50_v3  ;;  %v170_v24 = vld [vmem:[%s394_s1] sm:$0x3] }
  0x2c   :  { %p271_p5 = por %p270_p4, %p269_p3 }
  0x2e   :  { %p272_p6 = pnand %p271_p5, %p265_p2 }
  0xfe   :  { %v132_v5 = vpop.f32.mrb[0].mxu0 }
  0xff   :  { %v133_v6 = vadd.f32 %v189_v4, %v132_v5  ;;  %v206_v7 = vpop.f32.mrb[1].mxu0 }
 0x101   :  { %v139_v8 = vsel %vm138_vm2, %v133_v6, 0.0 }
 0x102   :  { %140 = vadd.xlane.f32.xlu0 %v139_v8 }
 0x18f   :  { %v141_v9 = vpop.xlane.xlu0 %140 }
 0x190   :  { %v143_v10 = vmul.f32 0.03125, %v141_v9 }
 0x192   :  { %v144_v11 = vsub.f32 %v133_v6, %v143_v10 }
 0x194   :  { %v145_v12 = vmul.f32 %v144_v11, %v144_v11 }
 0x196   :  { %v146_v13 = vsel %vm138_vm2, %v145_v12, 0.0 }
 0x197   :  { %147 = vadd.xlane.f32.xlu0 %v146_v13 }
 0x224   :  { %v148_v14 = vpop.xlane.xlu0 %147 }
 0x225   :  { %v149_v15 = vmul.f32 0.03125, %v148_v14 }
 0x227   :  { %v150_v16 = vadd.f32 1e-05, %v149_v15 }
 0x229   :  { %218 = vrsqrt.f32 %v150_v16 }
 0x233   :  { %v219_v17 = vpop.eup %218 }
 0x234   :  { %v152_v19 = vmul.f32 %v219_v17, %v144_v11 }
 0x236   :  { %v159_v21 = vmul.f32 %v191_v18, %v152_v19 }
 0x238   :  { %v166_v22 = vadd.f32 %v192_v20, %v159_v21 }
 0x23a   :  { %vm167_vm3 = vcmp.gt.f32.partialorder %v166_v22, 0.0  ;;  %v168_v23 = vmul.f32 0.2, %v166_v22 }
 0x23c   :  { %v169_v25 = vsel %vm167_vm3, %v166_v22, %v168_v23 }
 0x23d   :  { %v171_v26 = vadd.f32 %v170_v24, %v169_v25 }
 0x23f   :  { %172 = vst.msk [vmem:[#allocation7] sm:$0x3] %vm138_vm2, %v171_v26 }
 0x240   :  { %275 = shalt.err (!%p272_p6)
}
 0x241   :  { %s276_s7 = scalar_lea.hbm %s399_s6, 32 }
 0x242   :  { %p277_p7 = scmp.ne.s32.totalorder %s399_s6, %s276_s7  ;;  %p280_p8 = scmp.lt.u32.totalorder %s276_s7, %s399_s6 }
 0x244   :  { %p282_p9 = pnand %p280_p8, %p277_p7 }
 0x246   :  { %285 = shalt.err (!%p282_p9)
}
 0x247   :  { %182 = dma.vmem_to_hbm [thread:$0]  %s180_s29, 32, %s399_s6, [#allocation4]  }
 0x248   :  { %290 = dma.done.wait [#allocation4], 32  }
 0x249   :  { %291 = vsyncadd [#allocation4], 4294967264 }
 0x24a   :  { %186 = vsyncpa [#allocation3], 1 }
 0x24b   :  { %187 = vsyncpa [#allocation6], 1 }
 0x24c   :  { %188 = vsyncpa [#allocation4], 1 }

</bundles_post_ra>
